<compile_context>
chip_gen: v5e
topology: v5e:2x2
jax: 0.10.0
libtpu: 0.0.40
codegen_flags: <defaults>
</compile_context>

<pallas_src>
import functools

import jax
import jax.numpy as jnp
from jax.experimental import pallas as pl
from jax.experimental.pallas import tpu as pltpu


def _make_rmsnorm_kernel(eps: float, embed: int):
    inv_embed = 1.0 / float(embed)

    def kernel(x_ref, scale_ref, o_ref):
        # x_ref:     (block_rows, embed)  VMEM
        # scale_ref: (1, embed)           VMEM, broadcast over rows
        x = x_ref[...].astype(jnp.float32)
        mean_sq = jnp.sum(x * x, axis=-1, keepdims=True) * inv_embed  # XLU reduce
        inv_rms = jax.lax.rsqrt(mean_sq + eps)                        # EUP rsqrt
        scale = scale_ref[...].astype(jnp.float32)                    # (1, embed)
        o_ref[...] = (x * inv_rms * scale).astype(o_ref.dtype)

    return kernel


def _sublane_multiple(dtype) -> int:
    # 8 rows per 32-bit sublane; sub-32-bit dtypes pack along sublanes.
    itemsize = jnp.dtype(dtype).itemsize
    return max(8, 32 // itemsize)  # 8 (f32), 16 (bf16), 32 (int8/fp8)


def _choose_block_rows(rows: int, embed: int, dtype,
                       target_tile_bytes: int = 2 << 20) -> int:
    """Byte-budget-driven row block size (multiple of the sublane packing)."""
    itemsize = jnp.dtype(dtype).itemsize
    sub = _sublane_multiple(dtype)
    row_bytes = max(1, embed * itemsize)

    br = max(1, target_tile_bytes // row_bytes)
    br = max(sub, (br // sub) * sub)

    if br >= rows:
        if rows >= 2 * sub:
            # Split into >= 2 blocks so the "parallel" row axis can shard
            # across both TensorCores on v7x (and keep the pipeline busy).
            half = (rows + 1) // 2
            br = ((half + sub - 1) // sub) * sub
        else:
            # Single full-extent block (legal: block dim equals the array dim).
            br = rows
    return br


def _vmem_limit_bytes(block_rows: int, embed: int, dtype) -> int:
    itemsize = jnp.dtype(dtype).itemsize
    tile = block_rows * embed * itemsize
    tile_f32 = block_rows * embed * 4
    scale_bytes = embed * 4
    # double-buffered input + output, resident scale, ~3 fp32 temporaries,
    # plus 50% headroom.
    needed = 2 * tile + 2 * tile + 2 * scale_bytes + 3 * tile_f32
    limit = int(needed * 1.5) + (1 << 20)
    # Comfortable floor, and well under v7x's 64 MiB physical VMEM.
    return min(max(limit, 16 << 20), 48 << 20)


@functools.partial(jax.jit, static_argnames=("eps", "block_rows"))
def rmsnorm(x, scale, eps: float = 1e-8, block_rows: int | None = None):
    """RMSNorm over the last axis of `x`, scaled by `scale` (shape (embed,))."""
    orig_shape = x.shape
    embed = orig_shape[-1]
    rows = 1
    for d in orig_shape[:-1]:
        rows *= d

    # TODO(synk): the whole embed axis must fit in one VMEM tile (true for any
    # realistic embed size); an extremely large embed would need a two-level
    # (row, embed-chunk) reduction grid.

    x2d = x.reshape(rows, embed)
    scale2d = scale.reshape(1, embed)  # keep native dtype (fp32 parameter)

    sub = _sublane_multiple(x.dtype)
    if block_rows is None:
        block_rows = _choose_block_rows(rows, embed, x.dtype)
    else:
        block_rows = max(1, min(int(block_rows), rows))
        if block_rows != rows:
            block_rows = max(sub, (block_rows // sub) * sub)

    grid = (pl.cdiv(rows, block_rows),)
    kernel = _make_rmsnorm_kernel(float(eps), embed)

    out2d = pl.pallas_call(
        kernel,
        out_shape=jax.ShapeDtypeStruct((rows, embed), x.dtype),
        grid_spec=pltpu.PrefetchScalarGridSpec(
            num_scalar_prefetch=0,
            grid=grid,
            in_specs=[
                pl.BlockSpec((block_rows, embed), lambda i: (i, 0)),
                pl.BlockSpec((1, embed), lambda i: (0, 0)),
            ],
            out_specs=pl.BlockSpec((block_rows, embed), lambda i: (i, 0)),
        ),
        compiler_params=pltpu.CompilerParams(
            dimension_semantics=("parallel",),
            vmem_limit_bytes=_vmem_limit_bytes(block_rows, embed, x.dtype),
        ),
    )(x2d, scale2d)

    return out2d.reshape(orig_shape)


def _reference(x, scale, eps):
    xf = x.astype(jnp.float32)
    rms = jnp.sqrt(jnp.mean(xf * xf, axis=-1, keepdims=True) + eps)
    return (xf / rms * scale.astype(jnp.float32)).astype(x.dtype)


if __name__ == "__main__":
    key = jax.random.PRNGKey(0)
    eps = 1e-8
    k1, k2, k3, k4, k5 = jax.random.split(key, 5)

    # Case 1: the module's nominal small shape (batch=2, seq=8, embed=32),
    # scale = ones (matches nn.Parameter(torch.ones(embed_size))).
    x1 = jax.random.normal(k1, (2, 8, 32), dtype=jnp.float32)
    s1 = jnp.ones((32,), dtype=jnp.float32)
    o1 = jax.block_until_ready(rmsnorm(x1, s1, eps))
    r1 = _reference(x1, s1, eps)
    assert o1.shape == x1.shape
    assert jnp.allclose(o1, r1, atol=1e-5, rtol=1e-5), "mismatch (case 1)"

    # Case 2: ragged row count (21 rows, block 16) with a non-trivial scale —
    # exercises the trailing-block masking path (no pad copy).
    x2 = jax.random.normal(k2, (3, 7, 160), dtype=jnp.float32)
    s2 = jax.random.normal(k3, (160,), dtype=jnp.float32)
    o2 = jax.block_until_ready(rmsnorm(x2, s2, eps))
    r2 = _reference(x2, s2, eps)
    assert o2.shape == x2.shape
    assert jnp.allclose(o2, r2, atol=1e-5, rtol=1e-5), "mismatch (case 2)"

    # Case 3: bf16 activations (sublane packing multiple of 16), fp32 scale.
    x3 = jax.random.normal(k4, (4, 128, 256), dtype=jnp.float32).astype(jnp.bfloat16)
    s3 = jnp.ones((256,), dtype=jnp.float32)
    o3 = jax.block_until_ready(rmsnorm(x3, s3, eps))
    r3 = _reference(x3, s3, eps)
    assert o3.shape == x3.shape and o3.dtype == jnp.bfloat16
    assert jnp.allclose(o3.astype(jnp.float32), r3.astype(jnp.float32),
                        atol=2e-2, rtol=2e-2), "mismatch (case 3)"

    # Case 4: tiny input where rows < sublane multiple (single full-extent block).
    x4 = jax.random.normal(k5, (1, 3, 64), dtype=jnp.float32)
    s4 = jnp.ones((64,), dtype=jnp.float32)
    o4 = jax.block_until_ready(rmsnorm(x4, s4, eps))
    r4 = _reference(x4, s4, eps)
    assert o4.shape == x4.shape
    assert jnp.allclose(o4, r4, atol=1e-5, rtol=1e-5), "mismatch (case 4)"

    print("KERNEL_OK")
</pallas_src>

<mosaic_0001>
module attributes {stable_mosaic.version = 11 : i64} {
  func.func @kernel(%arg0: i32, %arg1: memref<8x32xf32, #tpu.memory_space<vmem>>, %arg2: memref<1x32xf32, #tpu.memory_space<vmem>>, %arg3: memref<8x32xf32, #tpu.memory_space<vmem>>) attributes {dimension_semantics = [#tpu.dimension_semantics<parallel>], iteration_bounds = array<i64: 2>, scalar_prefetch = 0 : i64, scratch_operands = 0 : i64, tpu.core_type = #tpu.core_type<tc>, window_params = [{transform_indices = @transform_0, window_bounds = array<i64: 8, 32>}, {pipeline_mode = #tpu.pipeline_mode<synchronous>, transform_indices = @transform_1, window_bounds = array<i64: 1, 32>}, {transform_indices = @transform_2, window_bounds = array<i64: 8, 32>}]} {
    %c0 = arith.constant 0 : index
    %c0_0 = arith.constant 0 : index
    %0 = vector.load %arg1[%c0, %c0_0] : memref<8x32xf32, #tpu.memory_space<vmem>>, vector<8x32xf32>
    %1 = arith.mulf %0, %0 : vector<8x32xf32>
    %cst = arith.constant dense<0.000000e+00> : vector<8xf32>
    %2 = vector.multi_reduction <add>, %1, %cst [1] : vector<8x32xf32> to vector<8xf32>
    %3 = vector.shape_cast %2 : vector<8xf32> to vector<8x1xf32>
    %cst_1 = arith.constant 3.125000e-02 : f32
    %4 = vector.broadcast %cst_1 : f32 to vector<8x1xf32>
    %5 = arith.mulf %3, %4 : vector<8x1xf32>
    %cst_2 = arith.constant 9.99999993E-9 : f32
    %6 = vector.broadcast %cst_2 : f32 to vector<8x1xf32>
    %7 = arith.addf %5, %6 : vector<8x1xf32>
    %8 = math.rsqrt %7 : vector<8x1xf32>
    %c0_3 = arith.constant 0 : index
    %c0_4 = arith.constant 0 : index
    %9 = vector.load %arg2[%c0_3, %c0_4] : memref<1x32xf32, #tpu.memory_space<vmem>>, vector<1x32xf32>
    %10 = vector.broadcast %8 : vector<8x1xf32> to vector<8x32xf32>
    %11 = arith.mulf %0, %10 : vector<8x32xf32>
    %12 = vector.broadcast %9 : vector<1x32xf32> to vector<8x32xf32>
    %13 = arith.mulf %11, %12 : vector<8x32xf32>
    %c0_5 = arith.constant 0 : index
    %c0_6 = arith.constant 0 : index
    %14 = vector.load %arg3[%c0_5, %c0_6] : memref<8x32xf32, #tpu.memory_space<vmem>>, vector<8x32xf32>
    tpu.vector_store %arg3[%c0_5, %c0_6], %13 {strides = array<i32>} : memref<8x32xf32, #tpu.memory_space<vmem>>, vector<8x32xf32>,
    return
  }
  func.func @transform_0(%arg0: i32) -> (i32, i32) {
    %c0_i32 = arith.constant 0 : i32
    %c0_i32_0 = arith.constant 0 : i32
    return %arg0, %c0_i32 : i32, i32
  }
  func.func @transform_1(%arg0: i32) -> (i32, i32) {
    %c0_i32 = arith.constant 0 : i32
    %c0_i32_0 = arith.constant 0 : i32
    %c0_i32_1 = arith.constant 0 : i32
    return %c0_i32, %c0_i32_0 : i32, i32
  }
  func.func @transform_2(%arg0: i32) -> (i32, i32) {
    %c0_i32 = arith.constant 0 : i32
    %c0_i32_0 = arith.constant 0 : i32
    return %arg0, %c0_i32 : i32, i32
  }
}

</mosaic_0001>

<bundles_post_ra>
// kernel: rmsnorm.1
= control target key start
LH: loop header
LB: loop body
LE: loop exit
PB: predicated region body
PF: predicated region fallthrough
CT: control target
= control target key end

     0   :  { %7 = vsyncpa [#allocation3], 0  ;;  %s578_s0 = inlined_call_operand.hbm [shape: f32[16,32], index: 0, kind: input, shape index: {}]   ;;  %s579_s1 = inlined_call_operand.vmem [shape: f32[1,32], index: 1, kind: input, shape index: {}]   ;;  %s580_s2 = inlined_call_operand.hbm [shape: f32[16,32], index: 2, kind: output, shape index: {}]  }
   0x1   :  { %9 = vsyncpa [#allocation3 + $0x1], 0 }
   0x2   :  { %10 = vsyncpa [#allocation4], 0 }
   0x3   :  { %12 = vsyncpa [#allocation4 + $0x1], 0  ;;  %s446_s9 = smov 0   ;;  %s448_s10 = smov 0  }
   0x4   :  { %s450_s11 = smov 0   ;;  %s452_s12 = smov 0  }
   0x5 LB: > { %s467_s13 = sadd.s32 4294967295, %s429_s12   ;;  %s272_s14 = sadd.s32 4294967294, %s429_s12   ;;  %s429_s12 = sphi %s452_s12, %s590_s12   ;;  %s425_s11 = sphi %s450_s11, %s589_s11   ;;  %s421_s10 = sphi %s448_s10, %s588_s10   ;;  %s417_s9 = sphi %s446_s9, %s587_s9  }
   0x6   : > { %s471_s15 = sadd.s32 1, %s429_s12   ;;  %s25_s16 = sadd.s32 1, %s425_s11 }
   0x7   : > { %s22_s17 = ssub.s32 %s429_s12, %s471_s15  ;;  %p32_p0 = scmp.ne.s32.totalorder %s425_s11, %s421_s10 }
   0x8   : > { %p23_p1 = scmp.eq.s32.totalorder %s22_s17, 0  ;;  %p33_p2 = scmp.eq.s32.totalorder %s429_s12, 0 }
   0x9   : > { %p38_p3 = scmp.ne.s32.totalorder %s421_s10, %s417_s9  ;;  %p39_p4 = scmp.eq.s32.totalorder %s467_s13, 0 }
   0xa   : > { %s483_s18 = scalar_select %p23_p1, %s425_s11, %s25_s16  }
   0xb   : > { %p485_p5 = por %p33_p2, %p32_p0  ;;  %p489_p6 = por %p39_p4, %p38_p3 }
   0xc   : > { %p83_p7 = scmp.eq.s32.totalorder %s467_s13, 1  ;;  %p89_p8 = scmp.eq.s32.totalorder %s272_s14, 1 }
   0xd   : > { %p296_p10 = scmp.lt.s32.totalorder %s429_s12, 2  ;;  %s112_s23 = sand.u32 1, %s425_s11  }
   0xe   : > { %p496_p11 = por %p83_p7, %p32_p0  ;;  %p500_p12 = por %p89_p8, %p38_p3 }
   0xf   : > { %s276_s24 = sshll.u32 %s429_s12, 3  ;;  %s275_s25 = sshll.u32 %s112_s23, 3 }
  0x10   : > { %s120_s28 = scalar_lea.hbm %s578_s0, %s276_s24  ;;  %s116_s30 = scalar_lea.vmem [#allocation2], %s275_s25 }
  0x11   : > { %s122_s29 = sshll.u32 %s120_s28, 4  ;;  %s124_s3 = sshll.u32 %s116_s30, 4  ;;  %s123_s29 = int_to_ptr.hbm [resolvable:$true] %s122_s29  ;;  %s125_s3 = int_to_ptr.vmem [resolvable:$true] %s124_s3 }
  0x12   : > { %p511_p13 = pnand %p296_p10, %p485_p5  ;;  %p277_p0 = scmp.ge.s32.totalorder %s429_s12, 1 }
  0x13   : > { %p129_p1 = scmp.lt.s32.totalorder %s429_s12, 3  ;;  %s113_s5 = scalar_lea.sflag [#allocation3], %s112_s23 }
  0x14   : > { %s333_s6 = sshra.s32 %s123_s29, 4  ;;  %p337_p3 = pneg %p511_p13  ;;  %s334_s6 = int_to_ptr.hbm [resolvable:$true] %s333_s6 }
  0x15   : > { %s335_s7 = scalar_lea.hbm %s334_s6, 8  ;;  %s340_s16 = scalar_lea.hbm %s578_s0, 16 }
  0x16   : > { %p336_p2 = scmp.ne.s32.totalorder %s334_s6, %s335_s7  ;;  %p341_p5 = scmp.lt.s32.totalorder %s334_s6, %s578_s0 }
  0x17   : > { %p342_p8 = scmp.lt.s32.totalorder %s340_s16, %s335_s7 }
  0x18   : > { %p338_p4 = pnand %p337_p3, %p336_p2 }
  0x19   : > { %p343_p10 = por %p342_p8, %p341_p5 }
  0x1a   : > { %p339_p7 = pneg %p338_p4 }
  0x1c   : > { %p344_p9 = pnand %p343_p10, %p339_p7 }
  0x1e   : > { %347 = shalt.err (!%p344_p9)
}
  0x1f   : > { %291 = dma.hbm_to_vmem [thread:$0]  (!%p511_p13), %s123_s29, 128, %s125_s3, %s113_s5  }
  0x20   : > { %p130_p2 = pnand %p277_p0, %p129_p1 }
  0x21   : > { %s532_s23 = sand.u32 (!%p130_p2), 1, %s421_s10  }
  0x22   : > { %133 = sbr.rel (%p130_p2) target bundleno = 189 (0xbd), region = 28  ;;  %s278_s24 = sshll.u32 (!%p130_p2), %s532_s23, 3 }
  0x23   : > { %s136_s25 = scalar_lea.sflag (!%p130_p2), [#allocation3], %s532_s23  ;;  %s139_s26 = scalar_lea.vmem (!%p130_p2), [#allocation2], %s278_s24 }
  0x27   : > { %408 = dma.done.wait (%p489_p6), %s136_s25, 128  }
  0x28   : > { %410 = vsyncadd (%p489_p6), %s136_s25, 4294967168  ;;  %v161_v0 = vld [vmem:[%s139_s26] sm:$0xff]  ;;  %vm163_vm0 = vcmask 261120   ;;  %s281_s27 = sshll.u32 %s467_s13, 3  ;;  %s160_s4 = scalar_lea.vmem [#allocation5], %s278_s24 }
  0x29   : > { %v162_v1 = vmul.f32 %v161_v0, %v161_v0  ;;  %s197_s29 = scalar_lea.hbm %s580_s2, %s281_s27  ;;  %v330_v12 = vld [vmem:[%s579_s1] ss:$0 sm:$0xff]  ;;  %s199_s5 = sshll.u32 %s160_s4, 4  ;;  %s200_s5 = int_to_ptr.vmem [resolvable:$true] %s199_s5 }
  0x2a   : > { %s201_s6 = sshll.u32 %s197_s29, 4  ;;  %s187_s13 = scalar_lea.sflag [#allocation4], %s532_s23  ;;  %s202_s6 = int_to_ptr.hbm [resolvable:$true] %s201_s6 }
  0x2b   : > { %v164_v2 = vsel %vm163_vm0, %v162_v1, 0.0  ;;  %s377_s7 = sshra.s32 %s202_s6, 4  ;;  %s383_s17 = scalar_lea.hbm %s580_s2, 16  ;;  %s378_s7 = int_to_ptr.hbm [resolvable:$true] %s377_s7 }
  0x2c   : > { %165 = vadd.xlane.f32.xlu0 %v164_v2  ;;  %s379_s8 = scalar_lea.hbm %s378_s7, 8  ;;  %p384_p0 = scmp.lt.s32.totalorder %s378_s7, %s580_s2 }
  0x2d   : > { %p380_p6 = scmp.ne.s32.totalorder %s378_s7, %s379_s8  ;;  %p385_p1 = scmp.lt.s32.totalorder %s383_s17, %s379_s8 }
  0x2f   : > { %p381_p9 = pnand %p380_p6, %p496_p11  ;;  %p386_p3 = por %p385_p1, %p384_p0 }
  0x31   : > { %p382_p13 = pneg %p381_p9 }
  0x33   : > { %p387_p4 = pnand %p386_p3, %p382_p13 }
  0x9f   : > { %v166_v3 = vpop.xlane.xlu0 %165 }
  0xa0   : > { %v167_v4 = vmul.f32 0.03125, %v166_v3 }
  0xa2   : > { %v168_v5 = vadd.f32 1e-08, %v167_v4 }
  0xa4   : > { %331 = vrsqrt.f32 %v168_v5  ;;  %vm175_vm2 = vweird.f32 %v168_v5 }
  0xaa   : > { %v332_v6 = vpop.eup %331 }
  0xab   : > { %v170_v7 = vmul.f32 %v332_v6, %v168_v5  ;;  %vm176_vm1 = vweird.f32 %v332_v6 }
  0xac   : > { %vm177_vm3 = vmor %vm175_vm2, %vm176_vm1 }
  0xad   : > { %v171_v8 = vmul.f32 %v332_v6, %v170_v7 }
  0xaf   : > { %v172_v9 = vmul.f32 0.5, %v171_v8 }
  0xb1   : > { %v173_v10 = vsub.f32 1.5, %v172_v9 }
  0xb3   : > { %v174_v11 = vmul.f32 %v332_v6, %v173_v10 }
  0xb5   : > { %v178_v13 = vsel %vm177_vm3, %v332_v6, %v174_v11 }
  0xb6   : > { %v180_v14 = vmul.f32 %v178_v13, %v161_v0 }
  0xb8   : > { %v184_v15 = vmul.f32 %v330_v12, %v180_v14 }
  0xba   : > { %185 = vst.msk [vmem:[%s160_s4] sm:$0xff] %vm163_vm0, %v184_v15 }
  0xbb   : > { %390 = shalt.err (!%p387_p4)
}
  0xbc   : > { %286 = dma.vmem_to_hbm [thread:$0]  (%p496_p11), %s200_s5, 128, %s202_s6, %s187_s13  }
  0xbd PF: > { %s213_s23 = sand.u32 1, %s417_s9   ;;  %p586_p7 = scmp.ge.s32.totalorder %s429_s12, 2 }
  0xbe   : > { %s214_s25 = scalar_lea.sflag [#allocation4], %s213_s23 }
  0xbf   : > { %p293_p5 = pnand %p586_p7, %p500_p12 }
  0xc1   : > { %p294_p8 = pneg %p293_p5 }
  0xc3   : > { %412 = dma.done.wait (%p294_p8), %s214_s25, 128  }
  0xc4   : > { %414 = vsyncadd (%p294_p8), %s214_s25, 4294967168  ;;  %p15_p10 = scmp.ge.s32.totalorder %s471_s15, 4   ;;  %s587_s9 = smov %s421_s10 }
  0xc5   : > { %s588_s10 = smov %s425_s11  ;;  %s589_s11 = smov %s483_s18 }
  0xc6   : > { %s590_s12 = smov %s471_s15  ;;  %17 = sbr.rel (!%p15_p10) target bundleno = 5 (0x5), region = 73 }
  0xcb   :  { %220 = vsyncpa [#allocation3], 1 }
  0xcc   :  { %222 = vsyncpa [#allocation3 + $0x1], 1 }
  0xcd   :  { %223 = vsyncpa [#allocation4], 1 }
  0xce   :  { %225 = vsyncpa [#allocation4 + $0x1], 1 }

</bundles_post_ra>
